<compile_context>
chip_gen: v7x
topology: tpu7x:2x2x1
jax: 0.10.0
libtpu: 0.0.40
codegen_flags: <defaults>
</compile_context>

<pallas_src>
import functools

import jax
import jax.numpy as jnp
from jax.experimental import pallas as pl
from jax.experimental.pallas import tpu as pltpu


def _bce_dice_kernel(x_ref, t_ref, loss_ref, bce_acc, st_acc, spt_acc,
                     *, tm, n_valid, smooth, needs_mask):
    k = pl.program_id(1)

    @pl.when(k == 0)
    def _():
        bce_acc[...] = jnp.zeros_like(bce_acc)
        st_acc[...] = jnp.zeros_like(st_acc)
        spt_acc[...] = jnp.zeros_like(spt_acc)

    # Stream in native dtype, do math in f32.
    x = x_ref[...].astype(jnp.float32)
    t = t_ref[...].astype(jnp.float32)

    # sigmoid via tanh: a single EUP transcendental (no exp + divide).
    s = 0.5 * (jnp.tanh(0.5 * x) + 1.0)
    # numerically-stable BCE-with-logits:  softplus(x) - x*t
    #   = max(x,0) - x*t + log(1 + exp(-|x|))
    e = jnp.exp(-jnp.abs(x))
    bce = jnp.maximum(x, 0.0) - x * t + jnp.log(1.0 + e)

    if needs_mask:
        # Mask out lane padding and any out-of-bounds rows of the last tile.
        rows = jax.lax.broadcasted_iota(jnp.int32, x.shape, 1) + k * tm
        lanes = jax.lax.broadcasted_iota(jnp.int32, x.shape, 2)
        valid = rows * 128 + lanes < n_valid
        bce = jnp.where(valid, bce, 0.0)
        s = jnp.where(valid, s, 0.0)
        t = jnp.where(valid, t, 0.0)

    # Element-wise accumulation only (VALU); no per-step cross-lane reduce.
    bce_acc[...] += bce
    st_acc[...] += s * t
    spt_acc[...] += s + t

    @pl.when(k == pl.num_programs(1) - 1)
    def _():
        bce_mean = jnp.sum(bce_acc[...]) / n_valid
        st = jnp.sum(st_acc[...])
        spt = jnp.sum(spt_acc[...])
        dice = 1.0 - (2.0 * st + smooth) / (spt + smooth)
        loss_ref[...] = jnp.broadcast_to(bce_mean + dice,
                                         loss_ref.shape).astype(loss_ref.dtype)


def invariant_bce_dice_loss(inputs, targets, smooth=1.0, block_rows=2048):
    """Per-batch BCE + Dice loss. inputs/targets: any shape (B, ...)."""
    # TODO(synk): optional `weight` tensor of InvariantBCELoss is not implemented
    # (module default weight=None path only).
    B = inputs.shape[0]
    x = inputs.reshape(B, -1)
    t = targets.reshape(B, -1)
    N = x.shape[1]

    # Make the flattened axis a multiple of 128 lanes so the (B, R, 128) view is
    # a free reshape; pad (rarely needed) with zeros, masked inside the kernel.
    rem = (-N) % 128
    if rem:
        x = jnp.pad(x, ((0, 0), (0, rem)))
        t = jnp.pad(t, ((0, 0), (0, rem)))
    R = (N + rem) // 128
    x = x.reshape(B, R, 128)
    t = t.reshape(B, R, 128)

    # Large sublane tiles (multiple of 8); ~1 MiB f32 per input block at tm=2048,
    # so 2 inputs x 2 pipeline buffers + 3 accumulators stay well inside VMEM on
    # v5e/v6e/v7x.
    tm = min(int(block_rows), ((R + 7) // 8) * 8)
    n_tiles = pl.cdiv(R, tm)
    needs_mask = (n_tiles * tm * 128 != N)

    kernel = functools.partial(_bce_dice_kernel, tm=tm, n_valid=N,
                               smooth=float(smooth), needs_mask=needs_mask)

    bytes_accessed = int(x.size * x.dtype.itemsize
                         + t.size * t.dtype.itemsize + B * 4)
    cost = pl.CostEstimate(flops=12 * B * N,
                           transcendentals=3 * B * N,
                           bytes_accessed=bytes_accessed)

    out = pl.pallas_call(
        kernel,
        out_shape=jax.ShapeDtypeStruct((B, 8, 128), jnp.float32),
        grid_spec=pltpu.PrefetchScalarGridSpec(
            num_scalar_prefetch=0,
            grid=(B, n_tiles),
            in_specs=[
                pl.BlockSpec((1, tm, 128), lambda b, k: (b, k, 0)),
                pl.BlockSpec((1, tm, 128), lambda b, k: (b, k, 0)),
            ],
            out_specs=pl.BlockSpec((1, 8, 128), lambda b, k: (b, 0, 0)),
            scratch_shapes=[
                pltpu.VMEM((1, tm, 128), jnp.float32),  # sum of BCE terms
                pltpu.VMEM((1, tm, 128), jnp.float32),  # sum of sigmoid(x)*t
                pltpu.VMEM((1, tm, 128), jnp.float32),  # sum of sigmoid(x)+t
            ],
        ),
        compiler_params=pltpu.CompilerParams(
            dimension_semantics=("parallel", "arbitrary"),
            vmem_limit_bytes=32 * 1024 * 1024),
        cost_estimate=cost,
    )(x, t)
    return out[:, 0, 0]


def _reference(inputs, targets, smooth=1.0):
    B = inputs.shape[0]
    x = inputs.reshape(B, -1).astype(jnp.float32)
    t = targets.reshape(B, -1).astype(jnp.float32)
    bce = -(t * jax.nn.log_sigmoid(x)
            + (1.0 - t) * jax.nn.log_sigmoid(-x)).mean(axis=1)
    s = jax.nn.sigmoid(x)
    inter = (s * t).sum(axis=1)
    dice = 1.0 - (2.0 * inter + smooth) / (s.sum(axis=1) + t.sum(axis=1) + smooth)
    return bce + dice


if __name__ == "__main__":
    key = jax.random.PRNGKey(0)
    k1, k2 = jax.random.split(key)
    # batch=2, channels=4, spatial=16x16
    inputs = jax.random.normal(k1, (2, 4, 16, 16), dtype=jnp.float32)
    targets = (jax.random.uniform(k2, (2, 4, 16, 16)) > 0.5).astype(jnp.float32)

    loss = invariant_bce_dice_loss(inputs, targets)
    loss = jax.block_until_ready(loss)

    ref = _reference(inputs, targets)
    assert loss.shape == (2,)
    assert jnp.allclose(loss, ref, atol=2e-5, rtol=2e-5), (loss, ref)
    print("KERNEL_OK")
</pallas_src>

<mosaic_0001>
module attributes {stable_mosaic.version = 11 : i64} {
  func.func @_bce_dice_kernel(%arg0: i32, %arg1: i32, %arg2: memref<1x8x128xf32, #tpu.memory_space<vmem>>, %arg3: memref<1x8x128xf32, #tpu.memory_space<vmem>>, %arg4: memref<1x8x128xf32, #tpu.memory_space<vmem>>, %arg5: memref<1x8x128xf32, #tpu.memory_space<vmem>>, %arg6: memref<1x8x128xf32, #tpu.memory_space<vmem>>, %arg7: memref<1x8x128xf32, #tpu.memory_space<vmem>>) attributes {dimension_semantics = [#tpu.dimension_semantics<parallel>, #tpu.dimension_semantics<arbitrary>], iteration_bounds = array<i64: 2, 1>, scalar_prefetch = 0 : i64, scratch_operands = 3 : i64, tpu.core_type = #tpu.core_type<tc>, window_params = [{transform_indices = @transform_0, window_bounds = array<i64: 1, 8, 128>}, {transform_indices = @transform_1, window_bounds = array<i64: 1, 8, 128>}, {transform_indices = @transform_2, window_bounds = array<i64: 1, 8, 128>}]} {
    %c0_i32 = arith.constant 0 : i32
    %0 = arith.cmpi eq, %arg1, %c0_i32 : i32
    %1 = arith.extui %0 : i1 to i32
    %c0_i32_0 = arith.constant 0 : i32
    %2 = arith.cmpi ne, %1, %c0_i32_0 : i32
    scf.if %2 {
      %cst_31 = arith.constant 0.000000e+00 : f32
      %38 = vector.broadcast %cst_31 : f32 to vector<1x8x128xf32>
      %c0_32 = arith.constant 0 : index
      %c0_33 = arith.constant 0 : index
      %c0_34 = arith.constant 0 : index
      %39 = vector.load %arg5[%c0_32, %c0_33, %c0_34] : memref<1x8x128xf32, #tpu.memory_space<vmem>>, vector<1x8x128xf32>
      tpu.vector_store %arg5[%c0_32, %c0_33, %c0_34], %38 {strides = array<i32>} : memref<1x8x128xf32, #tpu.memory_space<vmem>>, vector<1x8x128xf32>,
      %cst_35 = arith.constant 0.000000e+00 : f32
      %40 = vector.broadcast %cst_35 : f32 to vector<1x8x128xf32>
      %c0_36 = arith.constant 0 : index
      %c0_37 = arith.constant 0 : index
      %c0_38 = arith.constant 0 : index
      %41 = vector.load %arg6[%c0_36, %c0_37, %c0_38] : memref<1x8x128xf32, #tpu.memory_space<vmem>>, vector<1x8x128xf32>
      tpu.vector_store %arg6[%c0_36, %c0_37, %c0_38], %40 {strides = array<i32>} : memref<1x8x128xf32, #tpu.memory_space<vmem>>, vector<1x8x128xf32>,
      %cst_39 = arith.constant 0.000000e+00 : f32
      %42 = vector.broadcast %cst_39 : f32 to vector<1x8x128xf32>
      %c0_40 = arith.constant 0 : index
      %c0_41 = arith.constant 0 : index
      %c0_42 = arith.constant 0 : index
      %43 = vector.load %arg7[%c0_40, %c0_41, %c0_42] : memref<1x8x128xf32, #tpu.memory_space<vmem>>, vector<1x8x128xf32>
      tpu.vector_store %arg7[%c0_40, %c0_41, %c0_42], %42 {strides = array<i32>} : memref<1x8x128xf32, #tpu.memory_space<vmem>>, vector<1x8x128xf32>,
    } else {
    }
    %c0 = arith.constant 0 : index
    %c0_1 = arith.constant 0 : index
    %c0_2 = arith.constant 0 : index
    %3 = vector.load %arg2[%c0, %c0_1, %c0_2] : memref<1x8x128xf32, #tpu.memory_space<vmem>>, vector<1x8x128xf32>
    %c0_3 = arith.constant 0 : index
    %c0_4 = arith.constant 0 : index
    %c0_5 = arith.constant 0 : index
    %4 = vector.load %arg3[%c0_3, %c0_4, %c0_5] : memref<1x8x128xf32, #tpu.memory_space<vmem>>, vector<1x8x128xf32>
    %cst = arith.constant 5.000000e-01 : f32
    %5 = vector.broadcast %cst : f32 to vector<1x8x128xf32>
    %6 = arith.mulf %5, %3 : vector<1x8x128xf32>
    %7 = math.tanh %6 : vector<1x8x128xf32>
    %cst_6 = arith.constant 1.000000e+00 : f32
    %8 = vector.broadcast %cst_6 : f32 to vector<1x8x128xf32>
    %9 = arith.addf %7, %8 : vector<1x8x128xf32>
    %cst_7 = arith.constant 5.000000e-01 : f32
    %10 = vector.broadcast %cst_7 : f32 to vector<1x8x128xf32>
    %11 = arith.mulf %10, %9 : vector<1x8x128xf32>
    %12 = math.absf %3 : vector<1x8x128xf32>
    %cst_8 = arith.constant 0.000000e+00 : f32
    %13 = vector.broadcast %cst_8 : f32 to vector<1x8x128xf32>
    %14 = arith.subf %13, %12 : vector<1x8x128xf32>
    %15 = math.exp %14 : vector<1x8x128xf32>
    %cst_9 = arith.constant 0.000000e+00 : f32
    %16 = vector.broadcast %cst_9 : f32 to vector<1x8x128xf32>
    %17 = arith.maximumf %3, %16 : vector<1x8x128xf32>
    %18 = arith.mulf %3, %4 : vector<1x8x128xf32>
    %19 = arith.subf %17, %18 : vector<1x8x128xf32>
    %cst_10 = arith.constant 1.000000e+00 : f32
    %20 = vector.broadcast %cst_10 : f32 to vector<1x8x128xf32>
    %21 = arith.addf %20, %15 : vector<1x8x128xf32>
    %22 = math.log %21 : vector<1x8x128xf32>
    %23 = arith.addf %19, %22 : vector<1x8x128xf32>
    %c0_11 = arith.constant 0 : index
    %c0_12 = arith.constant 0 : index
    %c0_13 = arith.constant 0 : index
    %24 = vector.load %arg5[%c0_11, %c0_12, %c0_13] : memref<1x8x128xf32, #tpu.memory_space<vmem>>, vector<1x8x128xf32>
    %25 = arith.addf %24, %23 : vector<1x8x128xf32>
    %c0_14 = arith.constant 0 : index
    %c0_15 = arith.constant 0 : index
    %c0_16 = arith.constant 0 : index
    %26 = vector.load %arg5[%c0_14, %c0_15, %c0_16] : memref<1x8x128xf32, #tpu.memory_space<vmem>>, vector<1x8x128xf32>
    tpu.vector_store %arg5[%c0_14, %c0_15, %c0_16], %25 {strides = array<i32>} : memref<1x8x128xf32, #tpu.memory_space<vmem>>, vector<1x8x128xf32>,
    %c0_17 = arith.constant 0 : index
    %c0_18 = arith.constant 0 : index
    %c0_19 = arith.constant 0 : index
    %27 = vector.load %arg6[%c0_17, %c0_18, %c0_19] : memref<1x8x128xf32, #tpu.memory_space<vmem>>, vector<1x8x128xf32>
    %28 = arith.mulf %11, %4 : vector<1x8x128xf32>
    %29 = arith.addf %27, %28 : vector<1x8x128xf32>
    %c0_20 = arith.constant 0 : index
    %c0_21 = arith.constant 0 : index
    %c0_22 = arith.constant 0 : index
    %30 = vector.load %arg6[%c0_20, %c0_21, %c0_22] : memref<1x8x128xf32, #tpu.memory_space<vmem>>, vector<1x8x128xf32>
    tpu.vector_store %arg6[%c0_20, %c0_21, %c0_22], %29 {strides = array<i32>} : memref<1x8x128xf32, #tpu.memory_space<vmem>>, vector<1x8x128xf32>,
    %c0_23 = arith.constant 0 : index
    %c0_24 = arith.constant 0 : index
    %c0_25 = arith.constant 0 : index
    %31 = vector.load %arg7[%c0_23, %c0_24, %c0_25] : memref<1x8x128xf32, #tpu.memory_space<vmem>>, vector<1x8x128xf32>
    %32 = arith.addf %11, %4 : vector<1x8x128xf32>
    %33 = arith.addf %31, %32 : vector<1x8x128xf32>
    %c0_26 = arith.constant 0 : index
    %c0_27 = arith.constant 0 : index
    %c0_28 = arith.constant 0 : index
    %34 = vector.load %arg7[%c0_26, %c0_27, %c0_28] : memref<1x8x128xf32, #tpu.memory_space<vmem>>, vector<1x8x128xf32>
    tpu.vector_store %arg7[%c0_26, %c0_27, %c0_28], %33 {strides = array<i32>} : memref<1x8x128xf32, #tpu.memory_space<vmem>>, vector<1x8x128xf32>,
    %c0_i32_29 = arith.constant 0 : i32
    %35 = arith.cmpi eq, %arg1, %c0_i32_29 : i32
    %36 = arith.extui %35 : i1 to i32
    %c0_i32_30 = arith.constant 0 : i32
    %37 = arith.cmpi ne, %36, %c0_i32_30 : i32
    scf.if %37 {
      %c0_31 = arith.constant 0 : index
      %c0_32 = arith.constant 0 : index
      %c0_33 = arith.constant 0 : index
      %38 = vector.load %arg5[%c0_31, %c0_32, %c0_33] : memref<1x8x128xf32, #tpu.memory_space<vmem>>, vector<1x8x128xf32>
      %39 = vector.shape_cast %38 : vector<1x8x128xf32> to vector<1x1x8x128xf32>
      %cst_34 = arith.constant dense<0.000000e+00> : vector<1xf32>
      %40 = vector.multi_reduction <add>, %39, %cst_34 [1, 2, 3] : vector<1x1x8x128xf32> to vector<1xf32>
      %41 = vector.shape_cast %40 : vector<1xf32> to vector<1x1x1x1xf32>
      %42 = vector.extract %41[0, 0, 0, 0] : f32 from vector<1x1x1x1xf32>
      %cst_35 = arith.constant 1.024000e+03 : f32
      %43 = arith.divf %42, %cst_35 : f32
      %c0_36 = arith.constant 0 : index
      %c0_37 = arith.constant 0 : index
      %c0_38 = arith.constant 0 : index
      %44 = vector.load %arg6[%c0_36, %c0_37, %c0_38] : memref<1x8x128xf32, #tpu.memory_space<vmem>>, vector<1x8x128xf32>
      %45 = vector.shape_cast %44 : vector<1x8x128xf32> to vector<1x1x8x128xf32>
      %cst_39 = arith.constant dense<0.000000e+00> : vector<1xf32>
      %46 = vector.multi_reduction <add>, %45, %cst_39 [1, 2, 3] : vector<1x1x8x128xf32> to vector<1xf32>
      %47 = vector.shape_cast %46 : vector<1xf32> to vector<1x1x1x1xf32>
      %48 = vector.extract %47[0, 0, 0, 0] : f32 from vector<1x1x1x1xf32>
      %c0_40 = arith.constant 0 : index
      %c0_41 = arith.constant 0 : index
      %c0_42 = arith.constant 0 : index
      %49 = vector.load %arg7[%c0_40, %c0_41, %c0_42] : memref<1x8x128xf32, #tpu.memory_space<vmem>>, vector<1x8x128xf32>
      %50 = vector.shape_cast %49 : vector<1x8x128xf32> to vector<1x1x8x128xf32>
      %cst_43 = arith.constant dense<0.000000e+00> : vector<1xf32>
      %51 = vector.multi_reduction <add>, %50, %cst_43 [1, 2, 3] : vector<1x1x8x128xf32> to vector<1xf32>
      %52 = vector.shape_cast %51 : vector<1xf32> to vector<1x1x1x1xf32>
      %53 = vector.extract %52[0, 0, 0, 0] : f32 from vector<1x1x1x1xf32>
      %cst_44 = arith.constant 2.000000e+00 : f32
      %54 = arith.mulf %cst_44, %48 : f32
      %cst_45 = arith.constant 1.000000e+00 : f32
      %55 = arith.addf %54, %cst_45 : f32
      %cst_46 = arith.constant 1.000000e+00 : f32
      %56 = arith.addf %53, %cst_46 : f32
      %57 = arith.divf %55, %56 : f32
      %cst_47 = arith.constant 1.000000e+00 : f32
      %58 = arith.subf %cst_47, %57 : f32
      %59 = arith.addf %43, %58 : f32
      %60 = vector.broadcast %59 : f32 to vector<1x8x128xf32>
      %c0_48 = arith.constant 0 : index
      %c0_49 = arith.constant 0 : index
      %c0_50 = arith.constant 0 : index
      %61 = vector.load %arg4[%c0_48, %c0_49, %c0_50] : memref<1x8x128xf32, #tpu.memory_space<vmem>>, vector<1x8x128xf32>
      tpu.vector_store %arg4[%c0_48, %c0_49, %c0_50], %60 {strides = array<i32>} : memref<1x8x128xf32, #tpu.memory_space<vmem>>, vector<1x8x128xf32>,
    } else {
    }
    return
  }
  func.func @transform_0(%arg0: i32, %arg1: i32) -> (i32, i32, i32) {
    %c0_i32 = arith.constant 0 : i32
    %c0_i32_0 = arith.constant 0 : i32
    return %arg0, %arg1, %c0_i32 : i32, i32, i32
  }
  func.func @transform_1(%arg0: i32, %arg1: i32) -> (i32, i32, i32) {
    %c0_i32 = arith.constant 0 : i32
    %c0_i32_0 = arith.constant 0 : i32
    return %arg0, %arg1, %c0_i32 : i32, i32, i32
  }
  func.func @transform_2(%arg0: i32, %arg1: i32) -> (i32, i32, i32) {
    %c0_i32 = arith.constant 0 : i32
    %c0_i32_0 = arith.constant 0 : i32
    %c0_i32_1 = arith.constant 0 : i32
    return %arg0, %c0_i32, %c0_i32_0 : i32, i32, i32
  }
}

</mosaic_0001>

<bundles_post_ra>
// kernel: tpu_custom_call.1
= control target key start
LH: loop header
LB: loop body
LE: loop exit
PB: predicated region body
PF: predicated region fallthrough
CT: control target
= control target key end

     0   :  { %7 = vsyncpa [#allocation6], 0  ;;  %s903_s0 = inlined_call_operand.hbm [shape: f32[2,8,128], index: 0, kind: input, shape index: {}]   ;;  %s904_s1 = inlined_call_operand.hbm [shape: f32[2,8,128], index: 1, kind: input, shape index: {}]   ;;  %s905_s2 = inlined_call_operand.hbm [shape: f32[2,8,128], index: 2, kind: output, shape index: {}]  }
   0x1   :  { %9 = vsyncpa [#allocation6 + $0x1], 0 }
   0x2   :  { %10 = vsyncpa [#allocation9], 0 }
   0x3   :  { %12 = vsyncpa [#allocation9 + $0x1], 0 }
   0x4   :  { %13 = vsyncpa [#allocation7], 0 }
   0x5   :  { %15 = vsyncpa [#allocation7 + $0x1], 0  ;;  %s678_s9 = smov 0   ;;  %s680_s10 = smov 0  }
   0x6   :  { %s682_s11 = smov 0   ;;  %s684_s12 = smov 0  }
   0x7   :  { %s686_s13 = smov 0   ;;  %s688_s14 = smov 0  }
   0x8 LB: > { %s413_s15 = sadd.s32 4294967295, %s658_s14   ;;  %s414_s16 = sadd.s32 4294967294, %s658_s14   ;;  %s658_s14 = sphi %s688_s14, %s21_s14   ;;  %s654_s13 = sphi %s686_s13, %s925_s13   ;;  %s650_s12 = sphi %s684_s12, %s924_s12   ;;  %s646_s11 = sphi %s682_s11, %s923_s11   ;;  %s642_s10 = sphi %s680_s10, %s922_s10   ;;  %s638_s9 = sphi %s678_s9, %s921_s9  }
   0x9   : > { %s33_s17 = sadd.s32 1, %s654_s13  ;;  %s42_s18 = sadd.s32 1, %s646_s11 }
   0xa   : > { %p35_p0 = scmp.ge.s32.totalorder %s33_s17, 2  ;;  %p49_p1 = scmp.ne.s32.totalorder %s646_s11, %s642_s10 }
   0xb   : > { %p50_p2 = scmp.eq.s32.totalorder %s658_s14, 0  ;;  %p55_p3 = scmp.ne.s32.totalorder %s642_s10, %s638_s9 }
   0xc   : > { %s927_s17 = smov (%p35_p0, %s33_s17), 0  ;;  %p56_p5 = scmp.eq.s32.totalorder %s413_s15, 0 }
   0xd   : > { %p719_p4 = por %p50_p2, %p49_p1  ;;  %s37_s20 = ssub.s32 %s654_s13, %s927_s17 }
   0xe   : > { %p107_p6 = scmp.eq.s32.totalorder %s413_s15, 1  ;;  %p40_p7 = scmp.eq.s32.totalorder %s37_s20, 0 }
   0xf   : > { %p725_p8 = por %p56_p5, %p55_p3  ;;  %p113_p10 = scmp.eq.s32.totalorder %s414_s16, 1 }
  0x10   : > { %p729_p9 = por %p107_p6, %p49_p1  ;;  %p454_p13 = scmp.lt.s32.totalorder %s658_s14, 2 }
  0x11   : > { %s909_s21 = scalar_select %p725_p8, 1, 0 }
  0x12   : > { %s910_s22 = scalar_select %p729_p9, 1, 0 }
  0x13   : > { %s734_s23 = scalar_select %p40_p7, %s646_s11, %s42_s18  }
  0x14   : > { %p736_p11 = por %p113_p10, %p55_p3  ;;  %s743_s25 = sand.u32 1, %s646_s11  }
  0x15   : > { %s417_s26 = sshll.u32 %s743_s25, 3  ;;  %s418_s27 = sshll.u32 %s654_s13, 7 }
  0x16   : > { %s911_s24 = scalar_select %p736_p11, 1, 0 }
  0x17   : > { %s752_s30 = scalar_lea.hbm %s903_s0, %s418_s27  ;;  %s137_s3 = scalar_lea.vmem [#allocation5], %s417_s26 }
  0x18   : > { %s145_s4 = sshll.u32 %s137_s3, 4  ;;  %p760_p0 = pnand %p454_p13, %p719_p4  ;;  %s756_s4 = int_to_ptr.vmem [resolvable:$true] %s145_s4 }
  0x19   : > { %s134_s6 = scalar_lea.sflag [#allocation6], %s743_s25  ;;  %s512_s7 = scalar_lea.hbm %s752_s30, 128 }
  0x1a   : > { %p513_p3 = scmp.ne.s32.totalorder %s752_s30, %s512_s7  ;;  %p514_p5 = pneg %p760_p0 }
  0x1b   : > { %s517_s16 = scalar_lea.hbm %s903_s0, 256  ;;  %p518_p4 = scmp.lt.u32.totalorder %s752_s30, %s903_s0 }
  0x1c   : > { %p515_p6 = pnand %p514_p5, %p513_p3  ;;  %p519_p10 = scmp.lt.u32.totalorder %s517_s16, %s512_s7 }
  0x1d   : > { %p521_p12 = scmp.lt.u32.totalorder %s512_s7, %s752_s30 }
  0x1e   : > { %p516_p7 = pneg %p515_p6  ;;  %p520_p13 = por %p519_p10, %p518_p4 }
  0x20   : > { %p522_p1 = por %p521_p12, %p520_p13 }
  0x22   : > { %p523_p2 = pnand %p522_p1, %p516_p7 }
  0x24   : > { %526 = shalt.err (!%p523_p2)
}
  0x25   : > { %s527_s20 = scalar_lea.vmem %s756_s4, 128  ;;  %s660_s28 = smov [#allocation5]  }
  0x26   : > { %p528_p3 = scmp.ne.s32.totalorder %s756_s4, %s527_s20  ;;  %s532_s29 = sshll.u32 %s660_s28, 4  ;;  %s533_s29 = int_to_ptr.vmem [resolvable:$false] %s532_s29 }
  0x27   : > { %s534_s3 = scalar_lea.vmem %s533_s29, 256  ;;  %p535_p9 = scmp.lt.s32.totalorder %s756_s4, %s533_s29 }
  0x28   : > { %p530_p6 = pnand %p528_p3, %p514_p5  ;;  %p536_p4 = scmp.lt.s32.totalorder %s534_s3, %s527_s20 }
  0x2a   : > { %p531_p11 = pneg %p530_p6  ;;  %p537_p10 = por %p536_p4, %p535_p9 }
  0x2c   : > { %p538_p12 = pnand %p537_p10, %p531_p11 }
  0x2e   : > { %541 = shalt.err (!%p538_p12)
}
  0x2f   : > { %446 = dma.hbm_to_vmem [thread:$0]  (!%p760_p0), %s752_s30, 128, %s756_s4, %s134_s6  }
  0x30   : > { %p913_p1 = scmp.lt.s32.totalorder %s658_s14, 3  ;;  %p914_p2 = scmp.ge.s32.totalorder %s658_s14, 1 }
  0x31   : > { %s805_s16 = scalar_lea.hbm %s904_s1, %s418_s27  ;;  %s156_s18 = scalar_lea.vmem [#allocation8], %s417_s26 }
  0x32   : > { %p796_p7 = pnand %p914_p2, %p913_p1  ;;  %s164_s19 = sshll.u32 %s156_s18, 4  ;;  %s165_s19 = int_to_ptr.vmem [resolvable:$true] %s164_s19 }
  0x33   : > { %s153_s30 = scalar_lea.sflag [#allocation9], %s743_s25  ;;  %s542_s4 = scalar_lea.hbm %s805_s16, 128 }
  0x34   : > { %s915_s7 = scalar_select %p796_p7, 1, 0 }
  0x35   : > { %p543_p9 = scmp.ne.s32.totalorder %s805_s16, %s542_s4  ;;  %s547_s27 = scalar_lea.hbm %s904_s1, 256 }
  0x36   : > { %p548_p3 = scmp.lt.u32.totalorder %s805_s16, %s904_s1  ;;  %p549_p6 = scmp.lt.u32.totalorder %s547_s27, %s542_s4 }
  0x37   : > { %p545_p11 = pnand %p543_p9, %p514_p5  ;;  %p551_p10 = scmp.lt.u32.totalorder %s542_s4, %s805_s16 }
  0x38   : > { %p550_p4 = por %p549_p6, %p548_p3 }
  0x39   : > { %p546_p13 = pneg %p545_p11 }
  0x3a   : > { %p552_p12 = por %p551_p10, %p550_p4 }
  0x3c   : > { %p553_p1 = pnand %p552_p12, %p546_p13 }
  0x3e   : > { %556 = shalt.err (!%p553_p1)
}
  0x3f   : > { %s557_s25 = scalar_lea.vmem %s165_s19, 128  ;;  %s661_s26 = smov [#allocation8]  }
  0x40   : > { %p558_p2 = scmp.ne.s32.totalorder %s165_s19, %s557_s25  ;;  %s562_s3 = sshll.u32 %s661_s26, 4  ;;  %s563_s3 = int_to_ptr.vmem [resolvable:$false] %s562_s3 }
  0x41   : > { %s564_s8 = scalar_lea.vmem %s563_s3, 256  ;;  %p565_p8 = scmp.lt.s32.totalorder %s165_s19, %s563_s3 }
  0x42   : > { %p560_p9 = pnand %p558_p2, %p514_p5  ;;  %p566_p7 = scmp.lt.s32.totalorder %s564_s8, %s557_s25 }
  0x44   : > { %p561_p11 = pneg %p560_p9  ;;  %p567_p3 = por %p566_p7, %p565_p8 }
  0x46   : > { %p568_p6 = pnand %p567_p3, %p561_p11 }
  0x48   : > { %571 = shalt.err (!%p568_p6)
}
  0x49   : > { %449 = dma.hbm_to_vmem [thread:$0]  (!%p760_p0), %s805_s16, 128, %s165_s19, %s153_s30  }
  0x4a   : > { %p916_p13 = scmp.ne.s32.totalorder %s915_s7, 0 }
  0x4b   : > { %s832_s15 = sand.u32 (!%p916_p13), 1, %s642_s10   ;;  %p917_p8 = scmp.ne.s32.totalorder (!%p916_p13), %s909_s21, 0 }
  0x4c   : > { %173 = sbr.rel (%p916_p13) target bundleno = 415 (0x19f), region = 28  ;;  %s835_s18 = sshll.u32 (!%p916_p13), %s832_s15, 3 }
  0x4d   : > { %s176_s4 = scalar_lea.sflag (!%p916_p13), [#allocation6], %s832_s15  ;;  %s179_s6 = scalar_lea.vmem (!%p916_p13), [#allocation5], %s835_s18 }
  0x53   : > { %625 = dma.done.wait (%p917_p8), %s176_s4, 128  }
  0x54   : > { %627 = vsyncadd (%p917_p8), %s176_s4, 4294967168  ;;  %s185_s5 = scalar_lea.sflag [#allocation9], %s832_s15  ;;  %s188_s7 = scalar_lea.vmem [#allocation8], %s835_s18 }
  0x55   : > { %629 = dma.done.wait (%p917_p8), %s185_s5, 128  }
  0x56   : > { %631 = vsyncadd (%p917_p8), %s185_s5, 4294967168  ;;  %v221_v0 = vld [vmem:[%s179_s6] sm:$0xff]  ;;  %v222_v9 = vld [vmem:[%s188_s7] sm:$0xff]  ;;  %s426_s25 = sshll.u32 %s650_s12, 7  ;;  %s213_s26 = scalar_lea.vmem [#allocation10], %s835_s18 }
  0x57   : > { %v223_v1 = vmul.f32 0.5, %v221_v0  ;;  %v227_v2 = vand.u32 2147483647, %v221_v0  ;;  %v231_v12 = vmax.f32 %v221_v0, 0.0  ;;  %v232_v13 = vmul.f32 %v222_v9, %v221_v0  ;;  %s310_s3 = sshll.u32 %s213_s26, 4  ;;  %p918_p5 = scmp.ne.s32.totalorder %s910_s22, 0  ;;  %s856_s3 = int_to_ptr.vmem [resolvable:$true] %s310_s3 }
  0x58   : > { %s662_s12 = smov [#allocation10]  }
  0x59   : > { %504 = vtanh.f32 %v223_v1  ;;  %v228_v3 = vsub.f32 0.0, %v227_v2  ;;  %v233_v14 = vsub.f32 %v231_v12, %v232_v13  ;;  %s576_s18 = sshll.u32 %s662_s12, 4  ;;  %s577_s18 = int_to_ptr.vmem [resolvable:$false] %s576_s18 }
  0x5a   : > { %p579_p10 = scmp.lt.s32.totalorder %s856_s3, %s577_s18 }
  0x5b   : > { %v229_v4 = vmul.f32 1.442695, %v228_v3 }
  0x5d   : > { %506 = vpow2.f32 %v229_v4 }
  0x63   : > { %v505_v5 = vpop.eup %504 }
  0x64   : > { %v225_v6 = vadd.f32 1.0, %v505_v5 }
  0x66   : > { %v226_v7 = vmul.f32 0.5, %v225_v6 }
  0x67   : > { %v507_v8 = vpop.eup %506 }
  0x68   : > { %v246_v10 = vadd.f32 %v226_v7, %v222_v9  ;;  %v234_v11 = vadd.f32 1.0, %v507_v8  ;;  %v242_v18 = vmul.f32 %v226_v7, %v222_v9 }
  0x6a   : > { %276 = vadd.xlane.f32.xlu1 %v246_v10  ;;  %508 = vlog2.f32 %v234_v11 }
  0x74   : > { %v509_v15 = vpop.eup %508 }
  0x75   : > { %v236_v16 = vmul.f32 0.6931472, %v509_v15 }
  0x77   : > { %v237_v17 = vadd.f32 %v236_v16, %v233_v14 }
  0x79   : > { %253 = vadd.xlane.f32.xlu0 %v237_v17 }
  0x7d   : > { %266 = vadd.xlane.f32.xlu0 %v242_v18 }
  0xf7   : > { %v277_v19 = vpop.xlane.xlu1 %276 }
  0xf8   : > { %v278_v20 = vrot.slane %v277_v19, 4 }
  0xfa   : > { %v279_v21 = vadd.f32 %v278_v20, %v277_v19 }
  0xfc   : > { %v280_v25 = vrot.slane %v279_v21, 2 }
  0xfe   : > { %v281_v31 = vadd.f32 %v280_v25, %v279_v21 }
 0x100   : > { %v282_v36 = vrot.slane %v281_v31, 1 }
 0x102   : > { %v283_v39 = vadd.f32 %v282_v36, %v281_v31 }
 0x106   : > { %v254_v22 = vpop.xlane.xlu0 %253 }
 0x107   : > { %v255_v23 = vrot.slane %v254_v22, 4 }
 0x109   : > { %v256_v24 = vadd.f32 %v255_v23, %v254_v22 }
 0x10a   : > { %v267_v26 = vpop.xlane.xlu0 %266 }
 0x10b   : > { %v257_v27 = vrot.slane %v256_v24, 2  ;;  %v268_v28 = vrot.slane %v267_v26, 4 }
 0x10d   : > { %v269_v29 = vadd.f32 %v268_v28, %v267_v26  ;;  %v258_v30 = vadd.f32 %v257_v27, %v256_v24 }
 0x10f   : > { %v270_v32 = vrot.slane %v269_v29, 2  ;;  %v259_v33 = vrot.slane %v258_v30, 1 }
 0x111   : > { %v271_v34 = vadd.f32 %v270_v32, %v269_v29  ;;  %v260_v35 = vadd.f32 %v259_v33, %v258_v30 }
 0x113   : > { %429 = vpush %v260_v35  ;;  %v272_v37 = vrot.slane %v271_v34, 1 }
 0x115   : > { %v273_v38 = vadd.f32 %v272_v37, %v271_v34 }
 0x117   : > { %431 = vpush %v273_v38 }
 0x118   : > { %433 = vpush %v283_v39 }
 0x144   : > { %s430_s21 = spop %429 }
 0x145   : > { %s264_s8 = smul.f32 0.0009765625, %s430_s21  ;;  %s578_s21 = scalar_lea.vmem %s577_s18, 256 }
 0x148   : > { %s432_s16 = spop %431 }
 0x149   : > { %s434_s19 = spop %433  ;;  %s285_s20 = smul.f32 2.0, %s432_s16 }
 0x14a   : > { %s287_s30 = sadd.f32 1.0, %s434_s19  ;;  %s854_s19 = scalar_lea.hbm %s905_s2, %s426_s25 }
 0x14b   : > { %s286_s27 = sadd.f32 1.0, %s285_s20  ;;  %s297_s16 = scalar_lea.sflag [#allocation7], %s832_s15 }
 0x14c   : > { %v288_v40 = vstv %s287_s30  ;;  %s572_s30 = scalar_lea.vmem %s856_s3, 128 }
 0x14d   : > { %510 = vrcp.f32 %v288_v40  ;;  %p573_p0 = scmp.ne.s32.totalorder %s856_s3, %s572_s30  ;;  %p580_p12 = scmp.lt.s32.totalorder %s578_s21, %s572_s30 }
 0x14f   : > { %p574_p7 = pnand %p573_p0, %p918_p5  ;;  %p581_p1 = por %p580_p12, %p579_p10 }
 0x151   : > { %p575_p4 = pneg %p574_p7 }
 0x153   : > { %p582_p2 = pnand %p581_p1, %p575_p4 }
 0x157   : > { %v511_v41 = vpop.eup %510 }
 0x158   : > { %435 = vpush %v511_v41 }
 0x189   : > { %s436_s28 = spop %435 }
 0x18a   : > { %s291_s29 = smul.f32 %s436_s28, %s286_s27 }
 0x18c   : > { %s292_s4 = ssub.f32 1.0, %s291_s29 }
 0x18e   : > { %s293_s6 = sadd.f32 %s292_s4, %s264_s8 }
 0x190   : > { %v294_v42 = vstv %s293_s6 }
 0x191   : > { %295 = vst [vmem:[%s213_s26] sm:$0xff] %v294_v42 }
 0x192   : > { %585 = shalt.err (!%p582_p2)
}
 0x193   : > { %s586_s15 = scalar_lea.hbm %s854_s19, 128  ;;  %s590_s28 = scalar_lea.hbm %s905_s2, 256 }
 0x194   : > { %p587_p9 = scmp.ne.s32.totalorder %s854_s19, %s586_s15  ;;  %p591_p6 = scmp.lt.u32.totalorder %s854_s19, %s905_s2 }
 0x195   : > { %p592_p13 = scmp.lt.u32.totalorder %s590_s28, %s586_s15  ;;  %p594_p0 = scmp.lt.u32.totalorder %s586_s15, %s854_s19 }
 0x196   : > { %p588_p11 = pnand %p587_p9, %p918_p5 }
 0x197   : > { %p593_p8 = por %p592_p13, %p591_p6 }
 0x198   : > { %p589_p3 = pneg %p588_p11 }
 0x199   : > { %p595_p7 = por %p594_p0, %p593_p8 }
 0x19b   : > { %p596_p4 = pnand %p595_p7, %p589_p3 }
 0x19d   : > { %599 = shalt.err (!%p596_p4)
}
 0x19e   : > { %441 = dma.vmem_to_hbm [thread:$0]  (%p918_p5), %s856_s3, 128, %s854_s19, %s297_s16  }
 0x19f PF: > { %s322_s26 = sand.u32 1, %s638_s9   ;;  %p919_p10 = scmp.ne.s32.totalorder %s911_s24, 0 }
 0x1a0   : > { %p920_p12 = scmp.ge.s32.totalorder %s658_s14, 2  ;;  %s323_s8 = scalar_lea.sflag [#allocation7], %s322_s26 }
 0x1a2   : > { %p451_p1 = pnand %p920_p12, %p919_p10 }
 0x1a4   : > { %633 = dma.done.wait (!%p451_p1), %s323_s8, 128  }
 0x1a5   : > { %635 = vsyncadd (!%p451_p1), %s323_s8, 4294967168  ;;  %s21_s14 = sadd.s32 1, %s658_s14   ;;  %s921_s9 = smov %s642_s10 }
 0x1a6   : > { %p18_p2 = scmp.ge.s32.totalorder %s21_s14, 4   ;;  %s922_s10 = smov %s646_s11 }
 0x1a7   : > { %s923_s11 = smov %s734_s23  ;;  %s924_s12 = smov %s654_s13 }
 0x1a8   : > { %s925_s13 = smov %s927_s17  ;;  %20 = sbr.rel (!%p18_p2) target bundleno = 8 (0x8), region = 94 }
 0x1af   :  { %328 = vsyncpa [#allocation6], 1 }
 0x1b0   :  { %330 = vsyncpa [#allocation6 + $0x1], 1 }
 0x1b1   :  { %331 = vsyncpa [#allocation9], 1 }
 0x1b2   :  { %333 = vsyncpa [#allocation9 + $0x1], 1 }
 0x1b3   :  { %334 = vsyncpa [#allocation7], 1 }
 0x1b4   :  { %336 = vsyncpa [#allocation7 + $0x1], 1 }

</bundles_post_ra>
